<compile_context>
chip_gen: v7x
topology: tpu7x:2x2x1
jax: 0.10.0
libtpu: 0.0.40
codegen_flags: <defaults>
</compile_context>

<pallas_src>
import functools

import jax
import jax.numpy as jnp
from jax import lax
from jax.experimental import pallas as pl
from jax.experimental.pallas import tpu as pltpu


def _elu_plus_one(x):
    # ELU(alpha=1) + 1 == x + 1 (x > 0) else exp(x); strictly positive.
    return jnp.where(x > 0, x + 1.0, jnp.exp(x))


def _round_up(n, m):
    return ((n + m - 1) // m) * m


def _linear_attention_kernel(x_ref, w_ref, o_ref, *, p_eff, pp):
    """One grid step == `block_b` batch elements.

    x_ref : (Bt, L, D)   float32, unpadded (last two dims == full array dims)
    w_ref : (D, 2*Pp+D)  bfloat16, layout [Wq@proj | 0][Wk@proj | 0][Wv]; the q/k
            segments are zero-padded to Pp (multiple of 128) lanes so the slices
            below start at 128-aligned lane offsets.
    o_ref : (Bt, L, D)   float32, unpadded
    """
    bt, l, d = x_ref.shape

    # Single fused QKV projection: one (Bt*L, 2*Pp+D) MXU matmul, bf16 operands,
    # f32 accumulation.
    xf = x_ref[...].reshape(bt * l, d).astype(jnp.bfloat16)
    qkv = jnp.dot(xf, w_ref[...], preferred_element_type=jnp.float32)

    # 128-aligned lane slices of the fused result.
    qp = _elu_plus_one(qkv[:, :pp])          # (Bt*L, Pp) f32
    kp = _elu_plus_one(qkv[:, pp:2 * pp])    # (Bt*L, Pp) f32
    v = qkv[:, 2 * pp:]                      # (Bt*L, D)  f32

    # Only k' needs masking: padded weight lanes are exactly 0, so their feature
    # map is elu1(0) == 1. Zeroing k' there makes the padded rows of kv exactly 0,
    # so q's padded lanes contribute nothing to `num`; the normalizer is corrected
    # with a compile-time constant instead of a second mask multiply.
    lane = lax.broadcasted_iota(jnp.int32, kp.shape, 1)
    kp = jnp.where(lane < p_eff, kp, 0.0)

    # Normalizer from the f32 q' accumulator (constant correction for padded ones).
    z = pl.reciprocal(
        jnp.sum(qp, axis=-1, keepdims=True) - float(pp - p_eff) + 1e-8,
        approx=True,
    ).reshape(bt, l, 1)

    # Batched contractions on the MXU, bf16 operands / f32 accumulation.
    # 'blp,bld->bpd' contracts L (transposed-LHS matmul; no explicit XLU transpose).
    qb = qp.astype(jnp.bfloat16).reshape(bt, l, pp)
    kb = kp.astype(jnp.bfloat16).reshape(bt, l, pp)
    vb = v.astype(jnp.bfloat16).reshape(bt, l, d)
    kv = jnp.einsum('blp,bld->bpd', kb, vb, preferred_element_type=jnp.float32)
    num = jnp.einsum('blp,bpd->bld', qb, kv.astype(jnp.bfloat16),
                     preferred_element_type=jnp.float32)

    o_ref[...] = (num * z).astype(o_ref.dtype)


def _pick_block_b(B, L, D, Pp, *, budget_bytes=24 << 20):
    """Largest divisor of B whose per-step live VMEM fits `budget_bytes`, while
    keeping >= min(4, B) grid steps (>= 2 pipelined steps per v7x TensorCore).
    On single-TC v5e/v6e one could drop the step floor and just maximize block_b."""
    ncat = 2 * Pp + D
    for cand in range(B, 0, -1):
        if B % cand:
            continue
        if B // cand < min(4, B):
            continue
        per_b = (
            2 * 2 * L * D * 4           # x + out blocks, double-buffered, f32
            + L * ncat * 4              # fused qkv projection result
            + L * (2 * Pp + D) * 6      # q'/k'/v f32 + bf16 copies
            + Pp * D * 4                # kv accumulator
        )
        live = cand * per_b + 2 * D * ncat * 2   # + double-buffered bf16 weight
        if live <= budget_bytes:
            return cand
    return 1


def linear_attention(x, wq, wk, wv, projection, *, block_b=None):
    """x: (B, L, D); wq/wk/wv: (D, D) stored transposed (y = x @ W == PyTorch x @ W.T);
    projection: (D, P). Returns (B, L, D)."""
    B, L, D = x.shape
    P = projection.shape[1]
    Pp = _round_up(P, 128)

    # Fold the projection into the Q/K weights (associativity): (x@Wq)@proj == x@(Wq@proj).
    # Done once at full f32 precision so the fold adds no error.
    wqp = jnp.dot(wq, projection, precision='highest')   # (D, P)
    wkp = jnp.dot(wk, projection, precision='highest')   # (D, P)

    # One concatenated bf16 weight with 128-aligned segments: [Wq@proj|0][Wk@proj|0][Wv].
    w_cat = jnp.zeros((D, 2 * Pp + D), jnp.float32)
    w_cat = w_cat.at[:, :P].set(wqp)
    w_cat = w_cat.at[:, Pp:Pp + P].set(wkp)
    w_cat = w_cat.at[:, 2 * Pp:].set(wv)
    w_cat = w_cat.astype(jnp.bfloat16)   # bf16 MXU operand; accumulation stays f32 in-kernel

    if block_b is None:
        block_b = _pick_block_b(B, L, D, Pp)
    assert B % block_b == 0, "block_b must divide B"
    grid = (B // block_b,)

    kernel = functools.partial(_linear_attention_kernel, p_eff=P, pp=Pp)

    # x and the output stay unpadded in HBM: block last-two-dims equal the full array
    # dims, so there is no wrapper-side pad / strip pass (no extra HBM round trips).
    # NOTE: at real weight sizes, single-buffer the constant weight block
    # (pipeline_mode=pl.Buffered(1)) or DMA it once into scratch to halve its VMEM use.
    return pl.pallas_call(
        kernel,
        out_shape=jax.ShapeDtypeStruct((B, L, D), x.dtype),
        grid_spec=pltpu.PrefetchScalarGridSpec(
            num_scalar_prefetch=0,
            grid=grid,
            in_specs=[
                pl.BlockSpec((block_b, L, D), lambda b: (b, 0, 0)),
                pl.BlockSpec((D, 2 * Pp + D), lambda b: (0, 0)),
            ],
            out_specs=pl.BlockSpec((block_b, L, D), lambda b: (b, 0, 0)),
        ),
        compiler_params=pltpu.CompilerParams(
            dimension_semantics=("parallel",),
            vmem_limit_bytes=48 * 1024 * 1024,
        ),
    )(x, w_cat)


def linear_attention_ref(x, wq, wk, wv, projection):
    """Pure-JAX reference mirroring the PyTorch forward, evaluated at full f32 matmul
    precision (XLA's default TPU matmul precision is single-pass bf16, which is not a
    valid golden reference)."""
    with jax.default_matmul_precision('highest'):
        q = x @ wq
        k = x @ wk
        v = x @ wv
        q_prime = _elu_plus_one(q @ projection)
        k_prime = _elu_plus_one(k @ projection)
        kv = jnp.einsum('blp,bld->bpd', k_prime, v)
        num = jnp.einsum('blp,bpd->bld', q_prime, kv)
        z = 1.0 / (jnp.sum(q_prime, axis=-1, keepdims=True) + 1e-8)
        return num * z


if __name__ == "__main__":
    B, L, D, P = 2, 16, 32, 64   # batch, seq, dim, proj_dim (module default)

    key = jax.random.PRNGKey(0)
    kx, kq, kk, kv_, kp_ = jax.random.split(key, 5)

    x = jax.random.normal(kx, (B, L, D), dtype=jnp.float32)

    # nn.Linear(dim, dim, bias=False) weights, stored transposed so y = x @ W.
    scale = 1.0 / jnp.sqrt(jnp.float32(D))
    wq = jax.random.normal(kq, (D, D), dtype=jnp.float32) * scale
    wk = jax.random.normal(kk, (D, D), dtype=jnp.float32) * scale
    wv = jax.random.normal(kv_, (D, D), dtype=jnp.float32) * scale

    # Projection buffer: reduced QR of a random (dim, proj_dim) matrix. With dim <
    # proj_dim, reduced QR yields Q of shape (dim, dim), matching torch.linalg.qr.
    proj_raw = jax.random.normal(kp_, (D, P), dtype=jnp.float32)
    q_mat, _ = jnp.linalg.qr(proj_raw, mode='reduced')   # (D, min(D, P))
    projection = q_mat

    out = jax.block_until_ready(linear_attention(x, wq, wk, wv, projection))
    ref = linear_attention_ref(x, wq, wk, wv, projection)

    assert out.shape == (B, L, D)
    assert bool(jnp.all(jnp.isfinite(out)))
    # Kernel uses bf16 MXU operands with f32 accumulation (per the perf review), so the
    # tolerance is bf16-level against the f32 'highest'-precision reference.
    assert jnp.allclose(out, ref, atol=5e-2, rtol=5e-2), "mismatch vs reference"

    print("KERNEL_OK")
</pallas_src>

<mosaic_0001>
module attributes {stable_mosaic.version = 11 : i64} {
  func.func @_linear_attention_kernel(%arg0: i32, %arg1: memref<1x16x32xf32, #tpu.memory_space<vmem>>, %arg2: memref<32x288xbf16, #tpu.memory_space<vmem>>, %arg3: memref<1x16x32xf32, #tpu.memory_space<vmem>>) attributes {dimension_semantics = [#tpu.dimension_semantics<parallel>], iteration_bounds = array<i64: 2>, scalar_prefetch = 0 : i64, scratch_operands = 0 : i64, tpu.core_type = #tpu.core_type<tc>, window_params = [{transform_indices = @transform_0, window_bounds = array<i64: 1, 16, 32>}, {pipeline_mode = #tpu.pipeline_mode<synchronous>, transform_indices = @transform_1, window_bounds = array<i64: 32, 288>}, {transform_indices = @transform_2, window_bounds = array<i64: 1, 16, 32>}]} {
    %c0 = arith.constant 0 : index
    %c0_0 = arith.constant 0 : index
    %c0_1 = arith.constant 0 : index
    %0 = vector.load %arg1[%c0, %c0_0, %c0_1] : memref<1x16x32xf32, #tpu.memory_space<vmem>>, vector<1x16x32xf32>
    %1 = vector.shape_cast %0 : vector<1x16x32xf32> to vector<16x32xf32>
    %2 = arith.truncf %1 : vector<16x32xf32> to vector<16x32xbf16>
    %c0_2 = arith.constant 0 : index
    %c0_3 = arith.constant 0 : index
    %3 = vector.load %arg2[%c0_2, %c0_3] : memref<32x288xbf16, #tpu.memory_space<vmem>>, vector<32x288xbf16>
    %cst = arith.constant dense<0.000000e+00> : vector<16x288xf32>
    %4 = tpu.matmul %2, %3, %cst {dimension_numbers = #tpu.dot_dimension_numbers<[1], [0], [0], [1], [0, 0, 1, 1], [], []>} : vector<16x32xbf16>, vector<32x288xbf16>, vector<16x288xf32> -> vector<16x288xf32>
    %5 = vector.extract_strided_slice %4 {offsets = [0, 0], sizes = [16, 128], strides = [1, 1]} : vector<16x288xf32> to vector<16x128xf32>
    %cst_4 = arith.constant 0.000000e+00 : f32
    %6 = vector.broadcast %cst_4 : f32 to vector<16x128xf32>
    %7 = arith.cmpf ogt, %5, %6 : vector<16x128xf32>
    %cst_5 = arith.constant 1.000000e+00 : f32
    %8 = vector.broadcast %cst_5 : f32 to vector<16x128xf32>
    %9 = arith.addf %5, %8 : vector<16x128xf32>
    %10 = math.exp %5 : vector<16x128xf32>
    %11 = arith.select %7, %9, %10 : vector<16x128xi1>, vector<16x128xf32>
    %12 = vector.extract_strided_slice %4 {offsets = [0, 128], sizes = [16, 128], strides = [1, 1]} : vector<16x288xf32> to vector<16x128xf32>
    %cst_6 = arith.constant 0.000000e+00 : f32
    %13 = vector.broadcast %cst_6 : f32 to vector<16x128xf32>
    %14 = arith.cmpf ogt, %12, %13 : vector<16x128xf32>
    %cst_7 = arith.constant 1.000000e+00 : f32
    %15 = vector.broadcast %cst_7 : f32 to vector<16x128xf32>
    %16 = arith.addf %12, %15 : vector<16x128xf32>
    %17 = math.exp %12 : vector<16x128xf32>
    %18 = arith.select %14, %16, %17 : vector<16x128xi1>, vector<16x128xf32>
    %19 = vector.extract_strided_slice %4 {offsets = [0, 256], sizes = [16, 32], strides = [1, 1]} : vector<16x288xf32> to vector<16x32xf32>
    %20 = tpu.iota {dimensions = array<i32: 1>} : vector<16x128xi32>
    %c32_i32 = arith.constant 32 : i32
    %21 = vector.broadcast %c32_i32 : i32 to vector<16x128xi32>
    %22 = arith.cmpi slt, %20, %21 : vector<16x128xi32>
    %cst_8 = arith.constant 0.000000e+00 : f32
    %23 = vector.broadcast %cst_8 : f32 to vector<16x128xf32>
    %24 = arith.select %22, %18, %23 : vector<16x128xi1>, vector<16x128xf32>
    %cst_9 = arith.constant dense<0.000000e+00> : vector<16xf32>
    %25 = vector.multi_reduction <add>, %11, %cst_9 [1] : vector<16x128xf32> to vector<16xf32>
    %26 = vector.shape_cast %25 : vector<16xf32> to vector<16x1xf32>
    %cst_10 = arith.constant 9.600000e+01 : f32
    %27 = vector.broadcast %cst_10 : f32 to vector<16x1xf32>
    %28 = arith.subf %26, %27 : vector<16x1xf32>
    %cst_11 = arith.constant 9.99999993E-9 : f32
    %29 = vector.broadcast %cst_11 : f32 to vector<16x1xf32>
    %30 = arith.addf %28, %29 : vector<16x1xf32>
    %31 = tpu.reciprocal %30 {approx = true} : vector<16x1xf32> -> vector<16x1xf32>
    %32 = vector.shape_cast %31 : vector<16x1xf32> to vector<1x16x1xf32>
    %33 = arith.truncf %11 : vector<16x128xf32> to vector<16x128xbf16>
    %34 = vector.shape_cast %33 : vector<16x128xbf16> to vector<1x16x128xbf16>
    %35 = arith.truncf %24 : vector<16x128xf32> to vector<16x128xbf16>
    %36 = vector.shape_cast %35 : vector<16x128xbf16> to vector<1x16x128xbf16>
    %37 = arith.truncf %19 : vector<16x32xf32> to vector<16x32xbf16>
    %38 = vector.shape_cast %37 : vector<16x32xbf16> to vector<1x16x32xbf16>
    "tpu.trace_start"() <{level = 10 : i32, message = "blp,bld->bpd"}> : () -> ()
    %cst_12 = arith.constant dense<0.000000e+00> : vector<1x128x32xf32>
    %39 = tpu.matmul %36, %38, %cst_12 {dimension_numbers = #tpu.dot_dimension_numbers<[1], [1], [2], [2], [0, 0, 0, 2, 1, 2], [0], [0]>} : vector<1x16x128xbf16>, vector<1x16x32xbf16>, vector<1x128x32xf32> -> vector<1x128x32xf32>
    "tpu.trace_stop"() : () -> ()
    %40 = arith.truncf %39 : vector<1x128x32xf32> to vector<1x128x32xbf16>
    "tpu.trace_start"() <{level = 10 : i32, message = "blp,bpd->bld"}> : () -> ()
    %cst_13 = arith.constant dense<0.000000e+00> : vector<1x16x32xf32>
    %41 = tpu.matmul %34, %40, %cst_13 {dimension_numbers = #tpu.dot_dimension_numbers<[2], [1], [1], [2], [0, 0, 0, 1, 1, 2], [0], [0]>} : vector<1x16x128xbf16>, vector<1x128x32xbf16>, vector<1x16x32xf32> -> vector<1x16x32xf32>
    "tpu.trace_stop"() : () -> ()
    %42 = vector.broadcast %32 : vector<1x16x1xf32> to vector<1x16x32xf32>
    %43 = arith.mulf %41, %42 : vector<1x16x32xf32>
    %c0_14 = arith.constant 0 : index
    %c0_15 = arith.constant 0 : index
    %c0_16 = arith.constant 0 : index
    %44 = vector.load %arg3[%c0_14, %c0_15, %c0_16] : memref<1x16x32xf32, #tpu.memory_space<vmem>>, vector<1x16x32xf32>
    tpu.vector_store %arg3[%c0_14, %c0_15, %c0_16], %43 {strides = array<i32>} : memref<1x16x32xf32, #tpu.memory_space<vmem>>, vector<1x16x32xf32>,
    return
  }
  func.func @transform_0(%arg0: i32) -> (i32, i32, i32) {
    %c0_i32 = arith.constant 0 : i32
    %c0_i32_0 = arith.constant 0 : i32
    %c0_i32_1 = arith.constant 0 : i32
    return %arg0, %c0_i32, %c0_i32_0 : i32, i32, i32
  }
  func.func @transform_1(%arg0: i32) -> (i32, i32) {
    %c0_i32 = arith.constant 0 : i32
    %c0_i32_0 = arith.constant 0 : i32
    %c0_i32_1 = arith.constant 0 : i32
    return %c0_i32, %c0_i32_0 : i32, i32
  }
  func.func @transform_2(%arg0: i32) -> (i32, i32, i32) {
    %c0_i32 = arith.constant 0 : i32
    %c0_i32_0 = arith.constant 0 : i32
    %c0_i32_1 = arith.constant 0 : i32
    return %arg0, %c0_i32, %c0_i32_0 : i32, i32, i32
  }
}

</mosaic_0001>

<bundles_post_ra>
// kernel: tpu_custom_call.1
= control target key start
LH: loop header
LB: loop body
LE: loop exit
PB: predicated region body
PF: predicated region fallthrough
CT: control target
= control target key end

     0   :  { %7 = vsyncpa [#allocation3], 0  ;;  %s1220_s0 = inlined_call_operand.hbm [shape: f32[2,16,32], index: 0, kind: input, shape index: {}]   ;;  %s1221_s1 = inlined_call_operand.hbm [shape: bf16[32,288], index: 1, kind: input, shape index: {}]   ;;  %s1222_s2 = inlined_call_operand.hbm [shape: f32[2,16,32], index: 2, kind: output, shape index: {}]  }
   0x1   :  { %9 = vsyncpa [#allocation3 + $0x1], 0 }
   0x2   :  { %10 = vsyncpa [#allocation6], 0 }
   0x3   :  { %11 = vsyncpa [#allocation4], 0 }
   0x4   :  { %13 = vsyncpa [#allocation4 + $0x1], 0  ;;  %s981_s9 = smov 0   ;;  %s983_s10 = smov 0  }
   0x5   :  { %s985_s11 = smov 0   ;;  %s987_s12 = smov 0  }
   0x6 LB: > { %s1002_s13 = sadd.s32 4294967295, %s952_s12   ;;  %s635_s14 = sadd.s32 4294967294, %s952_s12   ;;  %s952_s12 = sphi %s987_s12, %s1242_s12   ;;  %s948_s11 = sphi %s985_s11, %s1241_s11   ;;  %s944_s10 = sphi %s983_s10, %s1240_s10   ;;  %s940_s9 = sphi %s981_s9, %s1239_s9  }
   0x7   : > { %p39_p0 = scmp.ne.s32.totalorder %s944_s10, %s940_s9  ;;  %p1223_p1 = scmp.eq.s32.totalorder %s1002_s13, 0 }
   0x8   : > { %p90_p3 = scmp.eq.s32.totalorder %s635_s14, 1  ;;  %p636_p5 = scmp.ge.s32.totalorder %s952_s12, 1 }
   0x9   : > { %p1011_p4 = por %p1223_p1, %p39_p0  ;;  %p97_p7 = scmp.lt.s32.totalorder %s952_s12, 3 }
   0xa   : > { %p1016_p6 = por %p90_p3, %p39_p0  ;;  %s954_s18 = smov [#allocation5]  }
   0xb   : > { %s1226_s15 = scalar_select %p1011_p4, 1, 0 }
   0xc   : > { %s1227_s16 = scalar_select %p1016_p6, 1, 0 }
   0xd   : > { %p1021_p8 = pnand %p636_p5, %p97_p7  ;;  %s109_s19 = sshll.u32 %s954_s18, 4  ;;  %s1025_s19 = int_to_ptr.vmem [resolvable:$true] %s109_s19 }
   0xe   : > { %s1037_s21 = sadd.s32 1, %s952_s12   ;;  %s26_s22 = sadd.s32 1, %s948_s11 }
   0xf   : > { %s1228_s17 = scalar_select %p1021_p8, 1, 0 }
  0x10   : > { %p746_p9 = pneg %p1021_p8  ;;  %s23_s23 = ssub.s32 %s952_s12, %s1037_s21 }
  0x11   : > { %s824_s26 = scalar_lea.hbm %s1221_s1, 768 }
  0x12   : > { %p1032_p11 = pnand %p746_p9, %p1223_p1  ;;  %p825_p12 = scmp.ne.s32.totalorder %s1221_s1, %s824_s26 }
  0x13   : > { %p831_p5 = scmp.lt.u32.totalorder %s824_s26, %s1221_s1 }
  0x14   : > { %p826_p13 = pneg %p1032_p11 }
  0x16   : > { %p827_p0 = pnand %p826_p13, %p825_p12 }
  0x18   : > { %p828_p3 = pneg %p827_p0 }
  0x1a   : > { %p833_p7 = pnand %p831_p5, %p828_p3 }
  0x1c   : > { %836 = shalt.err (!%p833_p7)
}
  0x1d   : > { %s837_s3 = scalar_lea.vmem %s1025_s19, 768  ;;  %p845_p2 = scmp.lt.s32.totalorder %s1025_s19, %s1025_s19 }
  0x1e   : > { %p838_p9 = scmp.ne.s32.totalorder %s1025_s19, %s837_s3  ;;  %p846_p6 = scmp.lt.s32.totalorder %s837_s3, %s837_s3 }
  0x20   : > { %p840_p10 = pnand %p838_p9, %p826_p13  ;;  %p847_p4 = por %p846_p6, %p845_p2 }
  0x22   : > { %p841_p1 = pneg %p840_p10 }
  0x24   : > { %p848_p8 = pnand %p847_p4, %p841_p1 }
  0x26   : > { %851 = shalt.err (!%p848_p8)
}
  0x27   : > { %s955_s4 = smov 192   ;;  %s956_s5 = smov 12  }
  0x28   : > { %749 = dma.hbm_to_vmem [thread:$0]  (!%p1032_p11), %s1221_s1, 768, %s1025_s19, [#allocation6], %s955_s4, %s955_s4, %s956_s5  }
  0x29   : > { %p24_p2 = scmp.eq.s32.totalorder %s23_s23, 0  ;;  %p33_p1 = scmp.ne.s32.totalorder %s948_s11, %s944_s10 }
  0x2a   : > { %p34_p4 = scmp.eq.s32.totalorder %s952_s12, 0  ;;  %p759_p6 = scmp.lt.s32.totalorder %s952_s12, 2 }
  0x2b   : > { %s1068_s8 = scalar_select %p24_p2, %s948_s11, %s26_s22  }
  0x2c   : > { %p35_p8 = por %p34_p4, %p33_p1  ;;  %p1230_p10 = scmp.eq.s32.totalorder %s1002_s13, 1 }
  0x2d   : > { %s123_s18 = sand.u32 1, %s948_s11   ;;  %s669_s24 = sshll.u32 %s952_s12, 8 }
  0x2e   : > { %p1072_p12 = por %p1230_p10, %p33_p1  ;;  %s639_s25 = sshll.u32 %s123_s18, 4 }
  0x2f   : > { %s1081_s27 = scalar_lea.hbm %s1220_s0, %s669_s24  ;;  %s127_s19 = scalar_lea.vmem [#allocation2], %s639_s25 }
  0x30   : > { %s134_s22 = sshll.u32 %s127_s19, 4  ;;  %p1083_p11 = pnand %p759_p6, %p35_p8  ;;  %s1087_s22 = int_to_ptr.vmem [resolvable:$true] %s134_s22 }
  0x31   : > { %s1089_s28 = scalar_lea.sflag [#allocation3], %s123_s18  ;;  %s852_s29 = scalar_lea.hbm %s1081_s27, 256 }
  0x32   : > { %p853_p13 = scmp.ne.s32.totalorder %s1081_s27, %s852_s29  ;;  %p854_p0 = pneg %p1083_p11 }
  0x33   : > { %s857_s4 = scalar_lea.hbm %s1220_s0, 512  ;;  %p858_p7 = scmp.lt.u32.totalorder %s1081_s27, %s1220_s0 }
  0x34   : > { %p855_p3 = pnand %p854_p0, %p853_p13  ;;  %p859_p9 = scmp.lt.u32.totalorder %s857_s4, %s852_s29 }
  0x35   : > { %p861_p1 = scmp.lt.u32.totalorder %s852_s29, %s1081_s27 }
  0x36   : > { %p856_p5 = pneg %p855_p3  ;;  %p860_p2 = por %p859_p9, %p858_p7 }
  0x38   : > { %p862_p4 = por %p861_p1, %p860_p2 }
  0x3a   : > { %p863_p6 = pnand %p862_p4, %p856_p5 }
  0x3c   : > { %866 = shalt.err (!%p863_p6)
}
  0x3d   : > { %s867_s7 = scalar_lea.vmem %s1087_s22, 256  ;;  %s957_s18 = smov [#allocation2]  }
  0x3e   : > { %p868_p8 = scmp.ne.s32.totalorder %s1087_s22, %s867_s7  ;;  %s872_s24 = sshll.u32 %s957_s18, 4  ;;  %s873_s24 = int_to_ptr.vmem [resolvable:$false] %s872_s24 }
  0x3f   : > { %s874_s25 = scalar_lea.vmem %s873_s24, 512  ;;  %p875_p3 = scmp.lt.s32.totalorder %s1087_s22, %s873_s24 }
  0x40   : > { %p870_p10 = pnand %p868_p8, %p854_p0  ;;  %p876_p7 = scmp.lt.s32.totalorder %s874_s25, %s867_s7 }
  0x42   : > { %p871_p13 = pneg %p870_p10  ;;  %p877_p9 = por %p876_p7, %p875_p3 }
  0x44   : > { %p878_p2 = pnand %p877_p9, %p871_p13 }
  0x46   : > { %881 = shalt.err (!%p878_p2)
}
  0x47   : > { %s958_s20 = smov 128   ;;  %s959_s26 = smov 8  }
  0x48   : > { %753 = dma.hbm_to_vmem [thread:$0]  (!%p1083_p11), %s1081_s27, 256, %s1087_s22, %s1089_s28, %s958_s20, %s958_s20, %s959_s26  }
  0x49   : > { %p1233_p0 = scmp.ne.s32.totalorder %s1228_s17, 0 }
  0x4a   : > { %s1120_s19 = sand.u32 (!%p1233_p0), 1, %s944_s10   ;;  %p1234_p5 = scmp.ne.s32.totalorder (!%p1233_p0), %s1226_s15, 0 }
  0x4b   : > { %146 = sbr.rel (%p1233_p0) target bundleno = 914 (0x392), region = 28  ;;  %s643_s29 = sshll.u32 (!%p1233_p0), %s1120_s19, 4 }
  0x4c   : > { %s149_s30 = scalar_lea.sflag (!%p1233_p0), [#allocation3], %s1120_s19  ;;  %s152_s3 = scalar_lea.vmem (!%p1233_p0), [#allocation2], %s643_s29 }
  0x52   : > { %927 = dma.done.wait (%p1234_p5), %s149_s30, 256  }
  0x53   : > { %929 = vsyncadd (%p1234_p5), %s149_s30, 4294967040  ;;  %p1235_p11 = scmp.eq.s32.totalorder %s1002_s13, 0 }
  0x55   : > { %931 = dma.done.wait (%p1235_p11), [#allocation6], 768   ;;  %p1236_p1 = pmov %p1235_p11 }
  0x56   : > { %v960_v0 = vmov 0   ;;  %v961_v1 = vmov 0.0   ;;  %vm962_vm0 = vmmov 0   ;;  %v804_v2 = vld [vmem:[#allocation5 + $0x4] ss:$12 sps:$4 sm:$0xff]   ;;  %v179_v7 = vld [vmem:[%s152_s3 + $0x8] sm:$0xff]  ;;  %v329_v22 = vlaneseq }
  0x57   : > { %933 = vsyncadd (%p1236_p1), [#allocation6], 4294966528  ;;  %257 = vmatprep.mubr.bf16.mxu0 %v960_v0  ;;  %692 = vmatprep.subr.bf16.mxu1 %v961_v1  ;;  %v806_v3 = vld [vmem:[#allocation5] ss:$12 sps:$4 sm:$0xff]   ;;  %v807_v4 = vld [vmem:[#allocation5 + $0x1c] ss:$12 sps:$4 sm:$0xff]  }
  0x58   : > { %696 = vmatprep.mubr.msk.bf16.mxu1 %vm962_vm0, %v961_v1  ;;  %225 = vmatprep.subr.bf16.mxu0 %v804_v2  ;;  %v809_v5 = vld [vmem:[#allocation5 + $0x18] ss:$12 sps:$4 sm:$0xff]   ;;  %v810_v8 = vld [vmem:[#allocation5 + $0x8] ss:$12 sps:$4 sm:$0xff]   ;;  %v811_v10 = vld [vmem:[#allocation5 + $0x20] ss:$12 sps:$4 sm:$0xff]  }
  0x59   : > { %v178_v6 = vld [vmem:[%s152_s3] sm:$0xff]  ;;  %226 = vmatpush1.bf16.msra.mxu0 %v806_v3  ;;  %693 = vmatpush3.bf16.msra.mxu1 %v810_v8  ;;  %vm221_vm1 = vcmask 261120   ;;  %v330_v25 = vand.u32 127, %v329_v22  ;;  %vm363_vm7 = vcmask 130048   ;;  %s176_s15 = scalar_lea.vmem [#allocation7], %s643_s29  ;;  %s670_s27 = sshll.u32 %s1002_s13, 8 }
  0x5a   : > { %227 = vmatprep.subr.bf16.mxu0 %v807_v4  ;;  %v180_v9 = vpack.c.bf16 %v179_v7, %v178_v6  ;;  %694 = vmatprep.subr.bf16.mxu1 %v961_v1  ;;  %s552_s17 = sshll.u32 %s176_s15, 4  ;;  %s1174_s28 = scalar_lea.hbm %s1222_s2, %s670_s27  ;;  %s1169_s17 = int_to_ptr.vmem [resolvable:$true] %s552_s17 }
  0x5b   : > { %vm331_vm3 = vcmp.lt.s32.totalorder %v330_v25, 32  ;;  %s539_s13 = scalar_lea.sflag [#allocation4], %s1120_s19  ;;  %s882_s4 = scalar_lea.vmem %s1169_s17, 256 }
  0x5c   : > { %p883_p4 = scmp.ne.s32.totalorder %s1169_s17, %s882_s4  ;;  %s963_s5 = smov [#allocation7]  }
  0x5d   : > { %228 = vmatpush1.bf16.msra.mxu0 %v809_v5  ;;  %695 = vmatpush3.bf16.msra.mxu1 %v811_v10  ;;  %s886_s6 = sshll.u32 %s963_s5, 4  ;;  %s887_s6 = int_to_ptr.vmem [resolvable:$false] %s886_s6 }
  0x5e   : > { %718 = vmatprep.subr.bf16.mxu1 %v961_v1  ;;  %p884_p6 = pnand %p883_p4, %p1072_p12  ;;  %s888_s7 = scalar_lea.vmem %s887_s6, 512 }
  0x5f   : > { %p889_p10 = scmp.lt.s32.totalorder %s1169_s17, %s887_s6  ;;  %p890_p13 = scmp.lt.s32.totalorder %s888_s7, %s882_s4 }
  0x60   : > { %652 = vmatmul.mubr.msk.bf16.vlgmr.msra.gmra.mrb[0].mxu0 %vm221_vm1, %v180_v9  ;;  %697 = vmatmul.mubr.msk.bf16.vlgmr.msra.gmra.mrb[0].mxu1 %vm221_vm1, %v180_v9  ;;  %p885_p8 = pneg %p884_p6 }
  0x61   : > { %734 = vmatprep.mubr.msk.bf16.mxu1 %vm962_vm0, %v961_v1  ;;  %p891_p3 = por %p890_p13, %p889_p10 }
  0x63   : > { %p892_p7 = pnand %p891_p3, %p885_p8 }
 0x133   : > { %v259_v11 = vpop.f32.mrb[0].mxu0  ;;  %v302_v18 = vpop.f32.mrb[0].mxu1 }
 0x134   : > { %v313_v12 = vmul.f32 1.442695, %v259_v11  ;;  %v261_v13 = vpop.f32.mrb[1].mxu0  ;;  %v698_v20 = vpop.f32.mrb[1].mxu1  ;;  %v311_v29 = vadd.f32 1.0, %v259_v11  ;;  %vm309_vm5 = vcmp.gt.f32.partialorder %v259_v11, 0.0 }
 0x135   : > { %v323_v14 = vmul.f32 1.442695, %v261_v13  ;;  %v263_v15 = vpop.f32.mrb[2].mxu0  ;;  %v305_v21 = vpop.f32.mrb[2].mxu1  ;;  %v321_v27 = vadd.f32 1.0, %v261_v13  ;;  %vm319_vm2 = vcmp.gt.f32.partialorder %v261_v13, 0.0 }
 0x136   : > { %812 = vpow2.f32 %v313_v12  ;;  %v315_v16 = vmul.f32 1.442695, %v263_v15  ;;  %v265_v17 = vpop.f32.mrb[3].mxu0  ;;  %v346_v23 = vpack.c.bf16 %v305_v21, %v302_v18  ;;  %v699_v24 = vpop.f32.mrb[3].mxu1  ;;  %v312_v30 = vadd.f32 1.0, %v263_v15 }
 0x137   : > { %814 = vpow2.f32 %v323_v14  ;;  %v325_v19 = vmul.f32 1.442695, %v265_v17  ;;  %v322_v32 = vadd.f32 1.0, %v265_v17  ;;  %vm310_vm4 = vcmp.gt.f32.partialorder %v263_v15, 0.0 }
 0x138   : > { %816 = vpow2.f32 %v315_v16  ;;  %700 = vmatprep.subr.bf16.mxu0 %v346_v23  ;;  %vm320_vm6 = vcmp.gt.f32.partialorder %v265_v17, 0.0 }
 0x139   : > { %818 = vpow2.f32 %v325_v19  ;;  %701 = vmatpush3.bf16.msra.mxu0 %v346_v23 }
 0x140   : > { %v813_v26 = vpop.eup %812 }
 0x141   : > { %v815_v28 = vpop.eup %814  ;;  %v1145_v36 = vsel %vm309_vm5, %v311_v29, %v813_v26 }
 0x142   : > { %v817_v31 = vpop.eup %816  ;;  %v327_v33 = vsel %vm319_vm2, %v321_v27, %v815_v28 }
 0x143   : > { %v819_v34 = vpop.eup %818  ;;  %v1143_v35 = vsel %vm310_vm4, %v312_v30, %v817_v31  ;;  %v332_v39 = vsel %vm331_vm3, %v327_v33, 0.0 }
 0x144   : > { %336 = vadd.xlane.f32.xlu1 %v1143_v35  ;;  %v328_v37 = vsel %vm320_vm6, %v322_v32, %v819_v34  ;;  %v344_v38 = vpack.c.bf16 %v1143_v35, %v1145_v36 }
 0x145   : > { %v333_v40 = vsel %vm331_vm3, %v328_v37, 0.0 }
 0x146   : > { %v345_v41 = vpack.c.bf16 %v333_v40, %v332_v39 }
 0x148   : > { %347 = vxpose.xlu0.c.b16.start.end [1/1] (short) %v345_v41, 128 }
 0x171   : > { %334 = vadd.xlane.f32.xlu0 %v1145_v36 }
 0x1ae   : > { %v355_v42 = vpop.trf.xlu0 }
 0x1af   : > { %702 = vmatprep.mubr.msk.bf16.mxu0 %vm363_vm7, %v355_v42 }
 0x1b2   : > { %v356_v43 = vpop.trf.xlu0 }
 0x1b3   : > { %703 = vmatmul.mubr.msk.bf16.vlgmr.msra.gmra.mrb[4].mxu0 %vm363_vm7, %v356_v43 }
 0x1b6   : > { %v357_v44 = vpop.trf.xlu0 }
 0x1b7   : > { %706 = vmatprep.mubr.msk.bf16.mxu0 %vm363_vm7, %v357_v44 }
 0x1ba   : > { %v358_v45 = vpop.trf.xlu0 }
 0x1bb   : > { %707 = vmatmul.mubr.msk.bf16.gmra.mrb[8].mxu0 %vm363_vm7, %v358_v45 }
 0x1be   : > { %v359_v46 = vpop.trf.xlu0 }
 0x1bf   : > { %710 = vmatprep.mubr.msk.bf16.mxu0 %vm363_vm7, %v359_v46 }
 0x1c2   : > { %v360_v47 = vpop.trf.xlu0 }
 0x1c3   : > { %711 = vmatmul.mubr.msk.bf16.gmra.mrb[12].mxu0 %vm363_vm7, %v360_v47 }
 0x1c6   : > { %v361_v48 = vpop.trf.xlu0 }
 0x1c7   : > { %714 = vmatprep.mubr.msk.bf16.mxu0 %vm363_vm7, %v361_v48 }
 0x1ca   : > { %v362_v49 = vpop.trf.xlu0 }
 0x1cb   : > { %715 = vmatmul.mubr.msk.bf16.gmra.mrb[16].mxu0 %vm363_vm7, %v362_v49 }
 0x1d1   : > { %v337_v12 = vpop.xlane.xlu1 %336 }
 0x1d2   : > { %v655_v14 = vadd.f32 -96.0, %v337_v12 }
 0x1d4   : > { %v341_v16 = vadd.f32 1e-08, %v655_v14 }
 0x1fe   : > { %v335_v11 = vpop.xlane.xlu0 %334 }
 0x1ff   : > { %v654_v13 = vadd.f32 -96.0, %v335_v11 }
 0x201   : > { %v340_v15 = vadd.f32 1e-08, %v654_v13 }
 0x203   : > { %820 = vrcp.f32 %v340_v15 }
 0x204   : > { %822 = vrcp.f32 %v341_v16 }
 0x20d   : > { %v821_v17 = vpop.eup %820 }
 0x20e   : > { %v823_v20 = vpop.eup %822 }
 0x286   : > { %v704_v50 = vpop.f32.mrb[4].mxu0 }
 0x287   : > { %v422_v51 = vpop.f32.mrb[5].mxu0 }
 0x288   : > { %v705_v52 = vpop.f32.mrb[6].mxu0 }
 0x289   : > { %v486_v53 = vpack.c.bf16 %v705_v52, %v704_v50  ;;  %v425_v54 = vpop.f32.mrb[7].mxu0 }
 0x28a   : > { %v485_v55 = vpack.c.bf16 %v425_v54, %v422_v51 }
 0x28c   : > { %719 = vmatpush3.bf16.msra.mxu1 %v485_v55 }
 0x28d   : > { %720 = vmatprep.subr.bf16.mxu1 %v961_v1 }
 0x28e   : > { %v708_v56 = vpop.f32.mrb[8].mxu0 }
 0x28f   : > { %v438_v57 = vpop.f32.mrb[9].mxu0 }
 0x290   : > { %v709_v58 = vpop.f32.mrb[10].mxu0  ;;  %721 = vmatpush3.bf16.msra.mxu1 %v486_v53 }
 0x291   : > { %v488_v59 = vpack.c.bf16 %v709_v58, %v708_v56  ;;  %v441_v60 = vpop.f32.mrb[11].mxu0  ;;  %722 = vmatprep.subr.bf16.mxu1 %v961_v1 }
 0x292   : > { %v487_v61 = vpack.c.bf16 %v441_v60, %v438_v57 }
 0x294   : > { %723 = vmatpush3.bf16.msra.mxu1 %v487_v61 }
 0x295   : > { %724 = vmatprep.subr.bf16.mxu1 %v961_v1 }
 0x296   : > { %v712_v62 = vpop.f32.mrb[12].mxu0 }
 0x297   : > { %v454_v63 = vpop.f32.mrb[13].mxu0 }
 0x298   : > { %v713_v0 = vpop.f32.mrb[14].mxu0  ;;  %725 = vmatpush3.bf16.msra.mxu1 %v488_v59 }
 0x299   : > { %v490_v2 = vpack.c.bf16 %v713_v0, %v712_v62  ;;  %v457_v3 = vpop.f32.mrb[15].mxu0  ;;  %726 = vmatprep.subr.bf16.mxu1 %v961_v1 }
 0x29a   : > { %v489_v4 = vpack.c.bf16 %v457_v3, %v454_v63 }
 0x29c   : > { %727 = vmatpush3.bf16.msra.mxu1 %v489_v4 }
 0x29d   : > { %728 = vmatprep.subr.bf16.mxu1 %v961_v1 }
 0x29e   : > { %v716_v5 = vpop.f32.mrb[16].mxu0 }
 0x29f   : > { %v470_v6 = vpop.f32.mrb[17].mxu0 }
 0x2a0   : > { %v717_v7 = vpop.f32.mrb[18].mxu0  ;;  %729 = vmatpush3.bf16.msra.mxu1 %v490_v2 }
 0x2a1   : > { %v492_v8 = vpack.c.bf16 %v717_v7, %v716_v5  ;;  %v473_v9 = vpop.f32.mrb[19].mxu0  ;;  %730 = vmatprep.subr.bf16.mxu1 %v961_v1 }
 0x2a2   : > { %v491_v10 = vpack.c.bf16 %v473_v9, %v470_v6 }
 0x2a4   : > { %731 = vmatpush3.bf16.msra.mxu1 %v491_v10 }
 0x2a5   : > { %732 = vmatprep.subr.bf16.mxu1 %v961_v1 }
 0x2a8   : > { %733 = vmatpush3.bf16.msra.mxu1 %v492_v8 }
 0x2ab   : > { %735 = vmatmul.mubr.bf16.vlgmr.msra.gmra.mrb[4].mxu1 %v344_v38 }
 0x37e   : > { %v527_v18 = vpop.f32.mrb[4].mxu1 }
 0x37f   : > { %v534_v19 = vmul.f32 %v821_v17, %v527_v18  ;;  %v736_v1 = vpop.f32.mrb[5].mxu1 }
 0x380   : > { %v530_v21 = vpop.f32.mrb[6].mxu1 }
 0x381   : > { %536 = vst.msk [vmem:[%s176_s15] sm:$0xff] %vm221_vm1, %v534_v19  ;;  %v535_v22 = vmul.f32 %v823_v20, %v530_v21  ;;  %v737_v23 = vpop.f32.mrb[7].mxu1 }
 0x383   : > { %537 = vst.msk [vmem:[%s176_s15 + $0x8] sm:$0xff] %vm221_vm1, %v535_v22 }
 0x384   : > { %895 = shalt.err (!%p892_p7)
}
 0x385   : > { %s896_s18 = scalar_lea.hbm %s1174_s28, 256  ;;  %s900_s20 = scalar_lea.hbm %s1222_s2, 512 }
 0x386   : > { %p897_p9 = scmp.ne.s32.totalorder %s1174_s28, %s896_s18  ;;  %p901_p5 = scmp.lt.u32.totalorder %s1174_s28, %s1222_s2 }
 0x387   : > { %p902_p11 = scmp.lt.u32.totalorder %s900_s20, %s896_s18  ;;  %p904_p4 = scmp.lt.u32.totalorder %s896_s18, %s1174_s28 }
 0x388   : > { %p898_p2 = pnand %p897_p9, %p1072_p12 }
 0x389   : > { %p903_p1 = por %p902_p11, %p901_p5 }
 0x38a   : > { %p899_p0 = pneg %p898_p2 }
 0x38b   : > { %p905_p6 = por %p904_p4, %p903_p1 }
 0x38d   : > { %p906_p8 = pnand %p905_p6, %p899_p0 }
 0x38f   : > { %909 = shalt.err (!%p906_p8)
}
 0x390   : > { %s964_s30 = smov 128   ;;  %s965_s3 = smov 8  }
 0x391   : > { %744 = dma.vmem_to_hbm [thread:$0]  (%p1072_p12), %s1169_s17, 256, %s1174_s28, %s539_s13, %s964_s30, %s964_s30, %s965_s3  }
 0x392 PF: > { %s567_s15 = sand.u32 1, %s940_s9   ;;  %p1237_p10 = scmp.ne.s32.totalorder %s1227_s16, 0 }
 0x393   : > { %p1238_p13 = scmp.ge.s32.totalorder %s952_s12, 2  ;;  %s568_s27 = scalar_lea.sflag [#allocation4], %s567_s15 }
 0x395   : > { %p755_p3 = pnand %p1238_p13, %p1237_p10 }
 0x397   : > { %935 = dma.done.wait (!%p755_p3), %s568_s27, 256  }
 0x398   : > { %937 = vsyncadd (!%p755_p3), %s568_s27, 4294967040  ;;  %p16_p7 = scmp.ge.s32.totalorder %s1037_s21, 4   ;;  %s1239_s9 = smov %s944_s10 }
 0x399   : > { %s1240_s10 = smov %s948_s11  ;;  %s1241_s11 = smov %s1068_s8 }
 0x39a   : > { %s1242_s12 = smov %s1037_s21  ;;  %18 = sbr.rel (!%p16_p7) target bundleno = 6 (0x6), region = 77 }
 0x3a1   :  { %573 = vsyncpa [#allocation3], 1 }
 0x3a2   :  { %575 = vsyncpa [#allocation3 + $0x1], 1 }
 0x3a3   :  { %576 = vsyncpa [#allocation6], 1 }
 0x3a4   :  { %577 = vsyncpa [#allocation4], 1 }
 0x3a5   :  { %579 = vsyncpa [#allocation4 + $0x1], 1 }

</bundles_post_ra>
